<compile_context>
chip_gen: v7x
topology: tpu7x:2x2x1
jax: 0.10.0
libtpu: 0.0.40
codegen_flags: <defaults>
</compile_context>

<pallas_src>
import numpy as np
import jax
import jax.numpy as jnp
from jax.experimental import pallas as pl
from jax.experimental.pallas import tpu as pltpu

C1, C2, KW1, KW2, HID = 64, 128, 5, 3, 128


def encoder_kernel(x_ref, w1_ref, b1_ref, w2_ref, b2_ref, pool_ref,
                   wfc_ref, bfc_ref, o_ref):
    # x_ref   : (1, TB*Lh, 2)  even/odd input phases, TB samples on sublanes
    # w1_ref  : (5, 128) f32   tap weights duplicated over both lane halves
    # b1_ref  : (1, 128) f32   bias duplicated over both lane halves
    # w2_ref  : (3, 64, 128) bf16     b2_ref : (1, 128) f32
    # pool_ref: (TB, TB*Lh - 4) bf16  per-sample averaging matrix (1/L2 on valid rows)
    # wfc_ref : (128, 128) bf16       bfc_ref: (1, 128) f32
    # o_ref   : (1, TB, 128) f32
    x = x_ref[0]                                   # (T, 2) f32
    T = x.shape[0]
    Pc = T - (KW1 // 2)                            # conv1+pool rows computed (= T - 2)
    L2c = Pc - (KW2 - 1)                           # conv2 rows computed     (= T - 4)

    # --- conv1 + ReLU + MaxPool1d(2): both pool phases packed into 128 lanes.
    #   lanes 0:64   -> c[2j]   (even conv positions)
    #   lanes 64:128 -> c[2j+1] (odd  conv positions)
    # Row t of A = [x[2t] | x[2t+1]], row t of B = [x[2t+1] | x[2t+2]]; every
    # tap is then a sublane-shifted slice of A or B times a (1,128) weight row.
    xe = jnp.broadcast_to(x[:, 0:1], (T, C1))            # x[2t]   -> 64 lanes
    xo = jnp.broadcast_to(x[:, 1:2], (T, C1))            # x[2t+1] -> 64 lanes
    A = jnp.concatenate([xe, xo], axis=1)                # (T,   128)
    B = jnp.concatenate([xo[:T - 1], xe[1:]], axis=1)    # (T-1, 128)

    acc = jnp.zeros((Pc, 2 * C1), jnp.float32)
    for k in range(KW1):                                 # static unroll (5 taps)
        src = A if k % 2 == 0 else B
        s = k // 2
        acc = acc + src[s:s + Pc, :] * w1_ref[k:k + 1, :]

    h = jnp.maximum(acc + b1_ref[...], 0.0)              # (Pc, 128) f32
    # MaxPool1d(2): max over the two packed phases (cross-half lane max, XLU).
    h1 = jnp.maximum(h[:, :C1], h[:, C1:]).astype(jnp.bfloat16)   # (Pc, 64)

    # --- conv2 + ReLU as 3 MXU matmuls over shifted windows (all TB samples).
    acc2 = jnp.zeros((L2c, C2), jnp.float32)
    for k in range(KW2):
        acc2 = acc2 + jnp.dot(h1[k:k + L2c, :], w2_ref[k],
                              preferred_element_type=jnp.float32)
    h2 = jnp.maximum(acc2 + b2_ref[...], 0.0)            # (L2c, 128) f32

    # --- AdaptiveAvgPool1d(1) per sample: ONE MXU matmul with the averaging
    # matrix (it also zeroes the cross-sample "garbage" boundary rows).
    pooled = jnp.dot(pool_ref[...], h2.astype(jnp.bfloat16),
                     preferred_element_type=jnp.float32)          # (TB, 128)

    # --- fc1, batched over the TB samples of this block.
    out = jnp.dot(pooled.astype(jnp.bfloat16), wfc_ref[...],
                  preferred_element_type=jnp.float32) + bfc_ref[...]
    o_ref[0] = out.astype(o_ref.dtype)


def encoder_pallas(x_ncl, params, tb_max=8):
    w1, b1, w2, b2, wfc, bfc = params
    N, C, L = x_ncl.shape
    assert C == 1 and L % 2 == 0 and L >= 2 * KW1
    Lh = L // 2
    P = Lh - 2                     # length after conv1 + ReLU + MaxPool1d(2)
    L2 = P - 2                     # conv2 output length

    # --- batch-block size ---------------------------------------------------
    # Amortize per-grid-step overhead; keep >= 2 grid steps when N >= 2 so the
    # "parallel" axis can shard across v7x's two TensorCores; rough VMEM cap
    # (A/B/acc/h at 128 lanes f32 + h2 + misc) so long signals fit in VMEM.
    per_sample_bytes = Lh * 3500
    tb_vmem = max(1, (8 << 20) // per_sample_bytes)
    TB = max(1, min(tb_max, tb_vmem, -(-N // 2)))
    Np = ((N + TB - 1) // TB) * TB
    G = Np // TB
    T = TB * Lh

    # --- glue (layout / parameter plumbing only) -----------------------------
    x = x_ncl[:, 0, :].astype(jnp.float32)                              # (N, L)
    if Np != N:
        x = jnp.concatenate([x, jnp.zeros((Np - N, L), x.dtype)], axis=0)
    # free reshape: group g, row r = sample g*TB + r//Lh, time r%Lh, phases last
    x_eo = x.reshape(G, T, 2)

    w1k = jnp.transpose(w1[:, 0, :], (1, 0)).astype(jnp.float32)        # (5, 64)
    w1_dup = jnp.concatenate([w1k, w1k], axis=1)                        # (5, 128)
    b1r = b1[None, :].astype(jnp.float32)                               # (1, 64)
    b1_dup = jnp.concatenate([b1r, b1r], axis=1)                        # (1, 128)
    w2t = jnp.transpose(w2, (2, 1, 0)).astype(jnp.bfloat16)             # (3, 64, 128)
    b2r = b2[None, :].astype(jnp.float32)                               # (1, 128)
    wfct = wfc.T.astype(jnp.bfloat16)                                   # (128, 128)
    bfcr = bfc[None, :].astype(jnp.float32)                             # (1, 128)

    # per-sample averaging matrix over the concatenated time axis
    r = np.arange(T - 4)
    pm = ((r // Lh)[None, :] == np.arange(TB)[:, None]) & ((r % Lh)[None, :] < L2)
    pool_mat = jnp.asarray(pm.astype(np.float32) / float(L2),
                           dtype=jnp.bfloat16)                          # (TB, T-4)

    out = pl.pallas_call(
        encoder_kernel,
        out_shape=jax.ShapeDtypeStruct((G, TB, HID), jnp.float32),
        grid=(G,),
        in_specs=[
            pl.BlockSpec((1, T, 2), lambda n: (n, 0, 0)),
            pl.BlockSpec((KW1, 2 * C1), lambda n: (0, 0)),
            pl.BlockSpec((1, 2 * C1), lambda n: (0, 0)),
            pl.BlockSpec((KW2, C1, C2), lambda n: (0, 0, 0)),
            pl.BlockSpec((1, C2), lambda n: (0, 0)),
            pl.BlockSpec((TB, T - 4), lambda n: (0, 0)),
            pl.BlockSpec((C2, HID), lambda n: (0, 0)),
            pl.BlockSpec((1, HID), lambda n: (0, 0)),
        ],
        out_specs=pl.BlockSpec((1, TB, HID), lambda n: (n, 0, 0)),
        compiler_params=pltpu.CompilerParams(dimension_semantics=("parallel",)),
    )(x_eo, w1_dup, b1_dup, w2t, b2r, pool_mat, wfct, bfcr)

    return out.reshape(Np, HID)[:N]                                     # (N, 128)


def encoder_ref(x_ncl, params):
    """Pure-JAX reference mirroring the PyTorch forward (for verification)."""
    w1, b1, w2, b2, wfc, bfc = params
    x = x_ncl[:, 0, :]
    N, L = x.shape
    L1 = L - (KW1 - 1)
    c1 = b1[None, :, None] + sum(
        x[:, None, k:k + L1] * w1[None, :, 0, k, None] for k in range(KW1))
    h1 = jnp.maximum(c1, 0.0)
    h1 = h1.reshape(N, C1, L1 // 2, 2).max(axis=-1)           # MaxPool1d(2)
    L2 = L1 // 2 - (KW2 - 1)
    c2 = b2[None, :, None] + sum(
        jnp.einsum('nct,oc->not', h1[:, :, k:k + L2], w2[:, :, k])
        for k in range(KW2))
    h2 = jnp.maximum(c2, 0.0)
    pooled = h2.mean(axis=2)                                  # AdaptiveAvgPool1d(1)
    return pooled @ wfc.T + bfc[None, :]


if __name__ == "__main__":
    key = jax.random.PRNGKey(0)
    ks = jax.random.split(key, 7)
    N, L = 8, 32                                              # small demo shapes

    # deterministic synthetic parameters (shapes from the nn.Module __init__)
    w1 = 0.20 * jax.random.normal(ks[0], (C1, 1, KW1), jnp.float32)
    b1 = 0.10 * jax.random.normal(ks[1], (C1,), jnp.float32)
    w2 = 0.05 * jax.random.normal(ks[2], (C2, C1, KW2), jnp.float32)
    b2 = 0.10 * jax.random.normal(ks[3], (C2,), jnp.float32)
    wfc = 0.08 * jax.random.normal(ks[4], (HID, C2), jnp.float32)
    bfc = 0.10 * jax.random.normal(ks[5], (HID,), jnp.float32)
    params = (w1, b1, w2, b2, wfc, bfc)

    x = jax.random.normal(ks[6], (N, 1, L), jnp.float32)      # NCL, like PyTorch

    out = jax.block_until_ready(encoder_pallas(x, params))
    ref = jax.block_until_ready(encoder_ref(x, params))

    assert out.shape == (N, HID), out.shape
    err = float(jnp.max(jnp.abs(out - ref)))
    assert jnp.allclose(out, ref, atol=2e-2, rtol=2e-2), f"max abs err {err}"
    print("KERNEL_OK")
</pallas_src>

<mosaic_0001>
module attributes {stable_mosaic.version = 11 : i64} {
  func.func @encoder_kernel(%arg0: i32, %arg1: memref<1x64x2xf32, #tpu.memory_space<vmem>>, %arg2: memref<5x128xf32, #tpu.memory_space<vmem>>, %arg3: memref<1x128xf32, #tpu.memory_space<vmem>>, %arg4: memref<3x64x128xbf16, #tpu.memory_space<vmem>>, %arg5: memref<1x128xf32, #tpu.memory_space<vmem>>, %arg6: memref<4x60xbf16, #tpu.memory_space<vmem>>, %arg7: memref<128x128xbf16, #tpu.memory_space<vmem>>, %arg8: memref<1x128xf32, #tpu.memory_space<vmem>>, %arg9: memref<1x4x128xf32, #tpu.memory_space<vmem>>) attributes {dimension_semantics = [#tpu.dimension_semantics<parallel>], iteration_bounds = array<i64: 2>, scalar_prefetch = 0 : i64, scratch_operands = 0 : i64, tpu.core_type = #tpu.core_type<tc>, window_params = [{transform_indices = @transform_0, window_bounds = array<i64: 1, 64, 2>}, {pipeline_mode = #tpu.pipeline_mode<synchronous>, transform_indices = @transform_1, window_bounds = array<i64: 5, 128>}, {pipeline_mode = #tpu.pipeline_mode<synchronous>, transform_indices = @transform_2, window_bounds = array<i64: 1, 128>}, {pipeline_mode = #tpu.pipeline_mode<synchronous>, transform_indices = @transform_3, window_bounds = array<i64: 3, 64, 128>}, {pipeline_mode = #tpu.pipeline_mode<synchronous>, transform_indices = @transform_4, window_bounds = array<i64: 1, 128>}, {pipeline_mode = #tpu.pipeline_mode<synchronous>, transform_indices = @transform_5, window_bounds = array<i64: 4, 60>}, {pipeline_mode = #tpu.pipeline_mode<synchronous>, transform_indices = @transform_6, window_bounds = array<i64: 128, 128>}, {pipeline_mode = #tpu.pipeline_mode<synchronous>, transform_indices = @transform_7, window_bounds = array<i64: 1, 128>}, {transform_indices = @transform_8, window_bounds = array<i64: 1, 4, 128>}]} {
    %c0 = arith.constant 0 : index
    %c0_0 = arith.constant 0 : index
    %c0_1 = arith.constant 0 : index
    %0 = vector.load %arg1[%c0, %c0_0, %c0_1] : memref<1x64x2xf32, #tpu.memory_space<vmem>>, vector<1x64x2xf32>
    %1 = vector.shape_cast %0 : vector<1x64x2xf32> to vector<64x2xf32>
    %2 = vector.extract_strided_slice %1 {offsets = [0, 0], sizes = [64, 1], strides = [1, 1]} : vector<64x2xf32> to vector<64x1xf32>
    %3 = vector.shape_cast %2 : vector<64x1xf32> to vector<64x1xf32>
    %4 = vector.broadcast %3 : vector<64x1xf32> to vector<64x64xf32>
    %5 = vector.extract_strided_slice %1 {offsets = [0, 1], sizes = [64, 1], strides = [1, 1]} : vector<64x2xf32> to vector<64x1xf32>
    %6 = vector.shape_cast %5 : vector<64x1xf32> to vector<64x1xf32>
    %7 = vector.broadcast %6 : vector<64x1xf32> to vector<64x64xf32>
    %8 = tpu.concatenate %4, %7 in 1 : vector<64x64xf32>, vector<64x64xf32> -> vector<64x128xf32>
    %9 = vector.extract_strided_slice %7 {offsets = [0, 0], sizes = [63, 64], strides = [1, 1]} : vector<64x64xf32> to vector<63x64xf32>
    %10 = vector.extract_strided_slice %4 {offsets = [1, 0], sizes = [63, 64], strides = [1, 1]} : vector<64x64xf32> to vector<63x64xf32>
    %11 = tpu.concatenate %9, %10 in 1 : vector<63x64xf32>, vector<63x64xf32> -> vector<63x128xf32>
    %cst = arith.constant 0.000000e+00 : f32
    %12 = vector.broadcast %cst : f32 to vector<62x128xf32>
    %13 = vector.extract_strided_slice %8 {offsets = [0, 0], sizes = [62, 128], strides = [1, 1]} : vector<64x128xf32> to vector<62x128xf32>
    %c0_2 = arith.constant 0 : index
    %c0_3 = arith.constant 0 : index
    %14 = vector.load %arg2[%c0_2, %c0_3] : memref<5x128xf32, #tpu.memory_space<vmem>>, vector<1x128xf32>
    %15 = vector.broadcast %14 : vector<1x128xf32> to vector<62x128xf32>
    %16 = arith.mulf %13, %15 : vector<62x128xf32>
    %17 = arith.addf %12, %16 : vector<62x128xf32>
    %18 = vector.extract_strided_slice %11 {offsets = [0, 0], sizes = [62, 128], strides = [1, 1]} : vector<63x128xf32> to vector<62x128xf32>
    %c1 = arith.constant 1 : index
    %c0_4 = arith.constant 0 : index
    %19 = vector.load %arg2[%c1, %c0_4] : memref<5x128xf32, #tpu.memory_space<vmem>>, vector<1x128xf32>
    %20 = vector.broadcast %19 : vector<1x128xf32> to vector<62x128xf32>
    %21 = arith.mulf %18, %20 : vector<62x128xf32>
    %22 = arith.addf %17, %21 : vector<62x128xf32>
    %23 = vector.extract_strided_slice %8 {offsets = [1, 0], sizes = [62, 128], strides = [1, 1]} : vector<64x128xf32> to vector<62x128xf32>
    %c2 = arith.constant 2 : index
    %c0_5 = arith.constant 0 : index
    %24 = vector.load %arg2[%c2, %c0_5] : memref<5x128xf32, #tpu.memory_space<vmem>>, vector<1x128xf32>
    %25 = vector.broadcast %24 : vector<1x128xf32> to vector<62x128xf32>
    %26 = arith.mulf %23, %25 : vector<62x128xf32>
    %27 = arith.addf %22, %26 : vector<62x128xf32>
    %28 = vector.extract_strided_slice %11 {offsets = [1, 0], sizes = [62, 128], strides = [1, 1]} : vector<63x128xf32> to vector<62x128xf32>
    %c3 = arith.constant 3 : index
    %c0_6 = arith.constant 0 : index
    %29 = vector.load %arg2[%c3, %c0_6] : memref<5x128xf32, #tpu.memory_space<vmem>>, vector<1x128xf32>
    %30 = vector.broadcast %29 : vector<1x128xf32> to vector<62x128xf32>
    %31 = arith.mulf %28, %30 : vector<62x128xf32>
    %32 = arith.addf %27, %31 : vector<62x128xf32>
    %33 = vector.extract_strided_slice %8 {offsets = [2, 0], sizes = [62, 128], strides = [1, 1]} : vector<64x128xf32> to vector<62x128xf32>
    %c4 = arith.constant 4 : index
    %c0_7 = arith.constant 0 : index
    %34 = vector.load %arg2[%c4, %c0_7] : memref<5x128xf32, #tpu.memory_space<vmem>>, vector<1x128xf32>
    %35 = vector.broadcast %34 : vector<1x128xf32> to vector<62x128xf32>
    %36 = arith.mulf %33, %35 : vector<62x128xf32>
    %37 = arith.addf %32, %36 : vector<62x128xf32>
    %c0_8 = arith.constant 0 : index
    %c0_9 = arith.constant 0 : index
    %38 = vector.load %arg3[%c0_8, %c0_9] : memref<1x128xf32, #tpu.memory_space<vmem>>, vector<1x128xf32>
    %39 = vector.broadcast %38 : vector<1x128xf32> to vector<62x128xf32>
    %40 = arith.addf %37, %39 : vector<62x128xf32>
    %cst_10 = arith.constant 0.000000e+00 : f32
    %41 = vector.broadcast %cst_10 : f32 to vector<62x128xf32>
    %42 = arith.maximumf %40, %41 : vector<62x128xf32>
    %43 = vector.extract_strided_slice %42 {offsets = [0, 0], sizes = [62, 64], strides = [1, 1]} : vector<62x128xf32> to vector<62x64xf32>
    %44 = vector.extract_strided_slice %42 {offsets = [0, 64], sizes = [62, 64], strides = [1, 1]} : vector<62x128xf32> to vector<62x64xf32>
    %45 = arith.maximumf %43, %44 : vector<62x64xf32>
    %46 = arith.truncf %45 : vector<62x64xf32> to vector<62x64xbf16>
    %cst_11 = arith.constant 0.000000e+00 : f32
    %47 = vector.broadcast %cst_11 : f32 to vector<60x128xf32>
    %48 = vector.extract_strided_slice %46 {offsets = [0, 0], sizes = [60, 64], strides = [1, 1]} : vector<62x64xbf16> to vector<60x64xbf16>
    %c0_12 = arith.constant 0 : index
    %c0_13 = arith.constant 0 : index
    %c0_14 = arith.constant 0 : index
    %49 = vector.load %arg4[%c0_12, %c0_13, %c0_14] : memref<3x64x128xbf16, #tpu.memory_space<vmem>>, vector<1x64x128xbf16>
    %50 = vector.shape_cast %49 : vector<1x64x128xbf16> to vector<64x128xbf16>
    %cst_15 = arith.constant dense<0.000000e+00> : vector<60x128xf32>
    %51 = tpu.matmul %48, %50, %cst_15 {dimension_numbers = #tpu.dot_dimension_numbers<[1], [0], [0], [1], [0, 0, 1, 1], [], []>} : vector<60x64xbf16>, vector<64x128xbf16>, vector<60x128xf32> -> vector<60x128xf32>
    %52 = arith.addf %47, %51 : vector<60x128xf32>
    %53 = vector.extract_strided_slice %46 {offsets = [1, 0], sizes = [60, 64], strides = [1, 1]} : vector<62x64xbf16> to vector<60x64xbf16>
    %c1_16 = arith.constant 1 : index
    %c0_17 = arith.constant 0 : index
    %c0_18 = arith.constant 0 : index
    %54 = vector.load %arg4[%c1_16, %c0_17, %c0_18] : memref<3x64x128xbf16, #tpu.memory_space<vmem>>, vector<1x64x128xbf16>
    %55 = vector.shape_cast %54 : vector<1x64x128xbf16> to vector<64x128xbf16>
    %cst_19 = arith.constant dense<0.000000e+00> : vector<60x128xf32>
    %56 = tpu.matmul %53, %55, %cst_19 {dimension_numbers = #tpu.dot_dimension_numbers<[1], [0], [0], [1], [0, 0, 1, 1], [], []>} : vector<60x64xbf16>, vector<64x128xbf16>, vector<60x128xf32> -> vector<60x128xf32>
    %57 = arith.addf %52, %56 : vector<60x128xf32>
    %58 = vector.extract_strided_slice %46 {offsets = [2, 0], sizes = [60, 64], strides = [1, 1]} : vector<62x64xbf16> to vector<60x64xbf16>
    %c2_20 = arith.constant 2 : index
    %c0_21 = arith.constant 0 : index
    %c0_22 = arith.constant 0 : index
    %59 = vector.load %arg4[%c2_20, %c0_21, %c0_22] : memref<3x64x128xbf16, #tpu.memory_space<vmem>>, vector<1x64x128xbf16>
    %60 = vector.shape_cast %59 : vector<1x64x128xbf16> to vector<64x128xbf16>
    %cst_23 = arith.constant dense<0.000000e+00> : vector<60x128xf32>
    %61 = tpu.matmul %58, %60, %cst_23 {dimension_numbers = #tpu.dot_dimension_numbers<[1], [0], [0], [1], [0, 0, 1, 1], [], []>} : vector<60x64xbf16>, vector<64x128xbf16>, vector<60x128xf32> -> vector<60x128xf32>
    %62 = arith.addf %57, %61 : vector<60x128xf32>
    %c0_24 = arith.constant 0 : index
    %c0_25 = arith.constant 0 : index
    %63 = vector.load %arg5[%c0_24, %c0_25] : memref<1x128xf32, #tpu.memory_space<vmem>>, vector<1x128xf32>
    %64 = vector.broadcast %63 : vector<1x128xf32> to vector<60x128xf32>
    %65 = arith.addf %62, %64 : vector<60x128xf32>
    %cst_26 = arith.constant 0.000000e+00 : f32
    %66 = vector.broadcast %cst_26 : f32 to vector<60x128xf32>
    %67 = arith.maximumf %65, %66 : vector<60x128xf32>
    %c0_27 = arith.constant 0 : index
    %c0_28 = arith.constant 0 : index
    %68 = vector.load %arg6[%c0_27, %c0_28] : memref<4x60xbf16, #tpu.memory_space<vmem>>, vector<4x60xbf16>
    %69 = arith.truncf %67 : vector<60x128xf32> to vector<60x128xbf16>
    %cst_29 = arith.constant dense<0.000000e+00> : vector<4x128xf32>
    %70 = tpu.matmul %68, %69, %cst_29 {dimension_numbers = #tpu.dot_dimension_numbers<[1], [0], [0], [1], [0, 0, 1, 1], [], []>} : vector<4x60xbf16>, vector<60x128xbf16>, vector<4x128xf32> -> vector<4x128xf32>
    %71 = arith.truncf %70 : vector<4x128xf32> to vector<4x128xbf16>
    %c0_30 = arith.constant 0 : index
    %c0_31 = arith.constant 0 : index
    %72 = vector.load %arg7[%c0_30, %c0_31] : memref<128x128xbf16, #tpu.memory_space<vmem>>, vector<128x128xbf16>
    %cst_32 = arith.constant dense<0.000000e+00> : vector<4x128xf32>
    %73 = tpu.matmul %71, %72, %cst_32 {dimension_numbers = #tpu.dot_dimension_numbers<[1], [0], [0], [1], [0, 0, 1, 1], [], []>} : vector<4x128xbf16>, vector<128x128xbf16>, vector<4x128xf32> -> vector<4x128xf32>
    %c0_33 = arith.constant 0 : index
    %c0_34 = arith.constant 0 : index
    %74 = vector.load %arg8[%c0_33, %c0_34] : memref<1x128xf32, #tpu.memory_space<vmem>>, vector<1x128xf32>
    %75 = vector.broadcast %74 : vector<1x128xf32> to vector<4x128xf32>
    %76 = arith.addf %73, %75 : vector<4x128xf32>
    %c0_35 = arith.constant 0 : index
    %c0_36 = arith.constant 0 : index
    %c0_37 = arith.constant 0 : index
    %77 = vector.load %arg9[%c0_35, %c0_36, %c0_37] : memref<1x4x128xf32, #tpu.memory_space<vmem>>, vector<1x4x128xf32>
    %78 = vector.shape_cast %77 : vector<1x4x128xf32> to vector<4x128xf32>
    %79 = vector.shape_cast %76 : vector<4x128xf32> to vector<1x4x128xf32>
    tpu.vector_store %arg9[%c0_35, %c0_36, %c0_37], %79 {strides = array<i32>} : memref<1x4x128xf32, #tpu.memory_space<vmem>>, vector<1x4x128xf32>,
    return
  }
  func.func @transform_0(%arg0: i32) -> (i32, i32, i32) {
    %c0_i32 = arith.constant 0 : i32
    %c0_i32_0 = arith.constant 0 : i32
    %c0_i32_1 = arith.constant 0 : i32
    return %arg0, %c0_i32, %c0_i32_0 : i32, i32, i32
  }
  func.func @transform_1(%arg0: i32) -> (i32, i32) {
    %c0_i32 = arith.constant 0 : i32
    %c0_i32_0 = arith.constant 0 : i32
    %c0_i32_1 = arith.constant 0 : i32
    return %c0_i32, %c0_i32_0 : i32, i32
  }
  func.func @transform_2(%arg0: i32) -> (i32, i32) {
    %c0_i32 = arith.constant 0 : i32
    %c0_i32_0 = arith.constant 0 : i32
    %c0_i32_1 = arith.constant 0 : i32
    return %c0_i32, %c0_i32_0 : i32, i32
  }
  func.func @transform_3(%arg0: i32) -> (i32, i32, i32) {
    %c0_i32 = arith.constant 0 : i32
    %c0_i32_0 = arith.constant 0 : i32
    %c0_i32_1 = arith.constant 0 : i32
    %c0_i32_2 = arith.constant 0 : i32
    return %c0_i32, %c0_i32_0, %c0_i32_1 : i32, i32, i32
  }
  func.func @transform_4(%arg0: i32) -> (i32, i32) {
    %c0_i32 = arith.constant 0 : i32
    %c0_i32_0 = arith.constant 0 : i32
    %c0_i32_1 = arith.constant 0 : i32
    return %c0_i32, %c0_i32_0 : i32, i32
  }
  func.func @transform_5(%arg0: i32) -> (i32, i32) {
    %c0_i32 = arith.constant 0 : i32
    %c0_i32_0 = arith.constant 0 : i32
    %c0_i32_1 = arith.constant 0 : i32
    return %c0_i32, %c0_i32_0 : i32, i32
  }
  func.func @transform_6(%arg0: i32) -> (i32, i32) {
    %c0_i32 = arith.constant 0 : i32
    %c0_i32_0 = arith.constant 0 : i32
    %c0_i32_1 = arith.constant 0 : i32
    return %c0_i32, %c0_i32_0 : i32, i32
  }
  func.func @transform_7(%arg0: i32) -> (i32, i32) {
    %c0_i32 = arith.constant 0 : i32
    %c0_i32_0 = arith.constant 0 : i32
    %c0_i32_1 = arith.constant 0 : i32
    return %c0_i32, %c0_i32_0 : i32, i32
  }
  func.func @transform_8(%arg0: i32) -> (i32, i32, i32) {
    %c0_i32 = arith.constant 0 : i32
    %c0_i32_0 = arith.constant 0 : i32
    %c0_i32_1 = arith.constant 0 : i32
    return %arg0, %c0_i32, %c0_i32_0 : i32, i32, i32
  }
}

</mosaic_0001>

<bundles_post_ra>
// kernel: tpu_custom_call.1
= control target key start
LH: loop header
LB: loop body
LE: loop exit
PB: predicated region body
PF: predicated region fallthrough
CT: control target
= control target key end

     0   :  { %13 = vsyncpa [#allocation3], 0  ;;  %s2193_s0 = inlined_call_operand.vmem [shape: f32[2,64,2], index: 0, kind: input, shape index: {}]   ;;  %s2194_s1 = inlined_call_operand.vmem [shape: f32[5,128], index: 1, kind: input, shape index: {}]   ;;  %s2195_s2 = inlined_call_operand.vmem [shape: f32[1,128], index: 2, kind: input, shape index: {}]   ;;  %s2196_s3 = inlined_call_operand.vmem [shape: bf16[3,64,128], index: 3, kind: input, shape index: {}]   ;;  %s2197_s4 = inlined_call_operand.vmem [shape: f32[1,128], index: 4, kind: input, shape index: {}]   ;;  %s2198_s5 = inlined_call_operand.vmem [shape: bf16[4,60], index: 5, kind: input, shape index: {}]   ;;  %s2199_s6 = inlined_call_operand.hbm [shape: bf16[128,128], index: 6, kind: input, shape index: {}]   ;;  %s2200_s7 = inlined_call_operand.vmem [shape: f32[1,128], index: 7, kind: input, shape index: {}]   ;;  %s2201_s8 = inlined_call_operand.hbm [shape: f32[2,4,128], index: 8, kind: output, shape index: {}]  }
   0x1   :  { %14 = vsyncpa [#allocation4], 0 }
   0x2   :  { %16 = vsyncpa [#allocation4 + $0x1], 0  ;;  %s1813_s27 = smov 0   ;;  %s1815_s28 = smov 0  }
   0x3   :  { %s1817_s29 = smov 0   ;;  %s1819_s30 = smov 0  }
   0x4 LB: > { %s1834_s9 = sadd.s32 4294967295, %s1757_s30   ;;  %s1357_s10 = sadd.s32 4294967294, %s1757_s30   ;;  %s1757_s30 = sphi %s1819_s30, %s2217_s30   ;;  %s1753_s29 = sphi %s1817_s29, %s2216_s29   ;;  %s1749_s28 = sphi %s1815_s28, %s2215_s28   ;;  %s1745_s27 = sphi %s1813_s27, %s2214_s27  }
   0x5   : > { %s1838_s11 = sadd.s32 1, %s1757_s30   ;;  %s202_s12 = sadd.s32 1, %s1753_s29 }
   0x6   : > { %s199_s13 = ssub.s32 %s1757_s30, %s1838_s11  ;;  %p212_p0 = scmp.ne.s32.totalorder %s1753_s29, %s1749_s28 }
   0x7   : > { %p200_p1 = scmp.eq.s32.totalorder %s199_s13, 0  ;;  %p213_p2 = scmp.eq.s32.totalorder %s1834_s9, 1 }
   0x8   : > { %p218_p3 = scmp.ne.s32.totalorder %s1749_s28, %s1745_s27  ;;  %p219_p4 = scmp.eq.s32.totalorder %s1357_s10, 1 }
   0x9   : > { %s1849_s14 = scalar_select %p200_p1, %s1753_s29, %s202_s12  }
   0xa   : > { %p1851_p5 = por %p213_p2, %p212_p0  ;;  %p1855_p6 = por %p219_p4, %p218_p3 }
   0xb   : > { %p1358_p7 = scmp.ge.s32.totalorder %s1757_s30, 1  ;;  %p226_p8 = scmp.lt.s32.totalorder %s1757_s30, 3 }
   0xc   : > { %s2205_s15 = scalar_select %p1851_p5, 1, 0 }
   0xd   : > { %s2206_s16 = scalar_select %p1855_p6, 1, 0 }
   0xe   : > { %p2202_p9 = scmp.eq.s32.totalorder %s1834_s9, 0  ;;  %p1862_p10 = pnand %p1358_p7, %p226_p8 }
   0xf   : > { %s1759_s18 = smov [#allocation2]   ;;  %s1663_s23 = scalar_lea.hbm %s2199_s6, 1024 }
  0x10   : > { %s2207_s17 = scalar_select %p1862_p10, 1, 0 }
  0x11   : > { %s253_s19 = sshll.u32 %s1759_s18, 4  ;;  %p1568_p11 = pneg %p1862_p10  ;;  %s254_s19 = int_to_ptr.vmem [resolvable:$true] %s253_s19 }
  0x12   : > { %p1664_p13 = scmp.ne.s32.totalorder %s2199_s6, %s1663_s23  ;;  %p1670_p3 = scmp.lt.u32.totalorder %s1663_s23, %s2199_s6 }
  0x13   : > { %p1870_p12 = pnand %p2202_p9, %p1568_p11 }
  0x15   : > { %p1665_p0 = pneg %p1870_p12 }
  0x17   : > { %p1666_p1 = pnand %p1665_p0, %p1664_p13 }
  0x19   : > { %p1667_p2 = pneg %p1666_p1 }
  0x1b   : > { %p1672_p4 = pnand %p1670_p3, %p1667_p2 }
  0x1d   : > { %1675 = shalt.err (!%p1672_p4)
}
  0x1e   : > { %s1676_s12 = scalar_lea.vmem %s254_s19, 1024  ;;  %p1684_p9 = scmp.lt.s32.totalorder %s254_s19, %s254_s19 }
  0x1f   : > { %p1677_p7 = scmp.ne.s32.totalorder %s254_s19, %s1676_s12  ;;  %p1685_p6 = scmp.lt.s32.totalorder %s1676_s12, %s1676_s12 }
  0x21   : > { %p1679_p8 = pnand %p1677_p7, %p1665_p0  ;;  %p1686_p5 = por %p1685_p6, %p1684_p9 }
  0x23   : > { %p1680_p11 = pneg %p1679_p8 }
  0x25   : > { %p1687_p10 = pnand %p1686_p5, %p1680_p11 }
  0x27   : > { %1690 = shalt.err (!%p1687_p10)
}
  0x28   : > { %s1760_s13 = smov 64   ;;  %s1761_s18 = smov 4  }
  0x29   : > { %1571 = dma.hbm_to_vmem [thread:$0]  (!%p1870_p12), %s2199_s6, 1024, %s254_s19, [#allocation3], %s1760_s13, %s1760_s13, %s1761_s18  }
  0x2a   : > { %p2209_p13 = scmp.ne.s32.totalorder %s2207_s17, 0 }
  0x2b   : > { %p2210_p1 = scmp.eq.s32.totalorder (!%p2209_p13), %s1834_s9, 0 }
  0x2c   : > { %280 = sbr.rel (%p2209_p13) target bundleno = 1081 (0x439), region = 52 }
  0x33   : > { %1736 = dma.done.wait (%p2210_p1), [#allocation3], 1024   ;;  %p2211_p0 = pmov %p2210_p1 }
  0x34   : > { %p314_p5 = scmp.lt.s32.totalorder %s1834_s9, 1  ;;  %v1762_v0 = vmov 0   ;;  %v1763_v8 = vmov 1   ;;  %vm409_vm0 = vcmask 1046528   ;;  %vm400_vm1 = vcmask 523264   ;;  %s1764_s18 = smov 64  }
  0x35   : > { %1738 = vsyncadd (%p2211_p0), [#allocation3], 4294966272  ;;  %1620 = vset.pattern.permute.xlu1 %v1762_v0  ;;  %1619 = vset.pattern.permute.xlu0 %v1762_v0  ;;  %v1910_v20 = vld [vmem:[%s2194_s1] ss:$0 sm:$0xff]  ;;  %v1915_v21 = vld [vmem:[%s2194_s1 + $0x1] ss:$0 sm:$0xff] }
  0x36   : > { %s315_s20 = scalar_select %p314_p5, %s1834_s9, 1  ;;  %v1921_v24 = vld [vmem:[%s2194_s1 + $0x2] ss:$0 sm:$0xff]  ;;  %v1926_v25 = vld [vmem:[%s2194_s1 + $0x3] ss:$0 sm:$0xff]  ;;  %vm608_vm2 = vcmask 1045504  }
  0x37   : > { %v1934_v30 = vld [vmem:[%s2194_s1 + $0x4] ss:$0 sm:$0xff]  ;;  %vm724_vm3 = vsmask.f32 7424  ;;  %vm1766_vm4 = vmmov 0   ;;  %vm1112_vm5 = vcmask 490496  }
  0x38   : > { %s1427_s23 = sshll.u32 %s315_s20, 6  ;;  %s311_s10 = sand.u32 1, %s1749_s28  }
  0x39   : > { %s318_s19 = scalar_lea.vmem %s2193_s0, %s1427_s23  ;;  %s1363_s12 = sshll.u32 %s311_s10, 2 }
  0x3a   : > { %v322_v1 = vld [vmem:[%s318_s19 + $0x10] sm:$0xff]  ;;  %v320_v2 = vld [vmem:[%s318_s19] sm:$0xff]  ;;  %v323_v3 = vld [vmem:[%s318_s19 + $0x18] sm:$0xff]  ;;  %s1424_s21 = sshll.u32 %s1834_s9, 6  ;;  %s313_s22 = scalar_lea.vmem [#allocation5], %s1363_s12 }
  0x3b   : > { %340 = vperm.xlu1 %1620, %v322_v1   ;;  %330 = vperm.xlu0 %1619, %v320_v2   ;;  %v321_v4 = vld [vmem:[%s318_s19 + $0x8] sm:$0xff]  ;;  %v324_v6 = vld [vmem:[%s318_s19 + $0x20] sm:$0xff]  ;;  %v326_v7 = vld [vmem:[%s318_s19 + $0x30] sm:$0xff]  ;;  %s1286_s20 = sshll.u32 %s313_s22, 4  ;;  %s2151_s25 = scalar_lea.hbm %s2201_s8, %s1424_s21  ;;  %s2153_s20 = int_to_ptr.vmem [resolvable:$true] %s1286_s20 }
  0x3c   : > { %v325_v5 = vld [vmem:[%s318_s19 + $0x28] sm:$0xff]  ;;  %v327_v9 = vld [vmem:[%s318_s19 + $0x38] sm:$0xff]  ;;  %s1273_s19 = scalar_lea.sflag [#allocation4], %s311_s10  ;;  %s1691_s9 = scalar_lea.vmem %s2153_s20, 64 }
  0x3d   : > { %p1692_p6 = scmp.ne.s32.totalorder %s2153_s20, %s1691_s9  ;;  %p2212_p9 = scmp.ne.s32.totalorder %s2205_s15, 0 }
  0x3e   : > { %s1767_s17 = smov [#allocation5]  }
  0x3f   : > { %345 = vperm.xlu1 %1620, %v323_v3   ;;  %335 = vperm.xlu0 %1619, %v321_v4   ;;  %p1693_p10 = pnand %p1692_p6, %p2212_p9  ;;  %s1695_s26 = sshll.u32 %s1767_s17, 4  ;;  %s1696_s26 = int_to_ptr.vmem [resolvable:$false] %s1695_s26 }
  0x40   : > { %s1697_s12 = scalar_lea.vmem %s1696_s26, 128  ;;  %p1698_p2 = scmp.lt.s32.totalorder %s2153_s20, %s1696_s26 }
  0x41   : > { %p1694_p12 = pneg %p1693_p10  ;;  %p1699_p3 = scmp.lt.s32.totalorder %s1697_s12, %s1691_s9 }
  0x43   : > { %355 = vperm.xlu1 %1620, %v325_v5   ;;  %350 = vperm.xlu0 %1619, %v324_v6   ;;  %p1700_p4 = por %p1699_p3, %p1698_p2 }
  0x45   : > { %p1701_p7 = pnand %p1700_p4, %p1694_p12 }
  0x47   : > { %1621 = vset.pattern.permute.xlu1 %v1763_v8  ;;  %360 = vperm.xlu0 %1619, %v326_v7  }
  0x48   : > { %373 = vperm.xlu1 %1621, %v321_v4  }
  0x4b   : > { %365 = vperm.xlu0 %1619, %v327_v9  }
  0x4c   : > { %377 = vperm.xlu1 %1621, %v322_v1  }
  0x4f   : > { %1622 = vset.pattern.permute.xlu0 %v1763_v8 }
  0x50   : > { %381 = vperm.xlu1 %1621, %v323_v3   ;;  %369 = vperm.xlu0 %1622, %v320_v2  }
  0x54   : > { %385 = vperm.xlu1 %1621, %v324_v6   ;;  %393 = vperm.xlu0 %1622, %v326_v7  }
  0x58   : > { %389 = vperm.xlu1 %1621, %v325_v5  }
  0x5c   : > { %397 = vperm.xlu1 %1621, %v327_v9  }
  0xba   : > { %v341_v10 = vpop.permute.xlu1 %340  ;;  %v331_v11 = vpop.permute.xlu0 %330 }
  0xbb   : > { %v413_v17 = vrot.slane %v341_v10, 1  ;;  %v410_v22 = vrot.slane %v331_v11, 1 }
  0xbe   : > { %v346_v12 = vpop.permute.xlu1 %345  ;;  %v336_v13 = vpop.permute.xlu0 %335 }
  0xbf   : > { %v411_v16 = vrot.slane %v336_v13, 1  ;;  %v415_v18 = vrot.slane %v346_v12, 1 }
  0xc1   : > { %v414_v27 = vsel %vm409_vm0, %v411_v16, %v413_v17  ;;  %v416_v33 = vsel %vm409_vm0, %v413_v17, %v415_v18  ;;  %v412_v43 = vsel %vm409_vm0, %v410_v22, %v411_v16 }
  0xc2   : > { %v1901_v14 = vpop.permute.xlu1 %355  ;;  %v1903_v15 = vpop.permute.xlu0 %350 }
  0xc3   : > { %v417_v23 = vrot.slane %v1903_v15, 1  ;;  %v419_v28 = vrot.slane %v1901_v14, 1 }
  0xc5   : > { %v418_v42 = vsel %vm409_vm0, %v415_v18, %v417_v23  ;;  %v420_v46 = vsel %vm409_vm0, %v417_v23, %v419_v28 }
  0xc6   : > { %v1905_v19 = vpop.permute.xlu0 %360 }
  0xc7   : > { %v374_v26 = vpop.permute.xlu1 %373  ;;  %v421_v29 = vrot.slane %v1905_v19, 1 }
  0xc8   : > { %v402_v31 = vsel %vm400_vm1, %v336_v13, %v374_v26  ;;  %v434_v32 = vsel %vm400_vm1, %v374_v26, %v414_v27 }
  0xc9   : > { %v447_v34 = vmul.f32 %v1910_v20, %v402_v31  ;;  %v468_v35 = vmul.f32 %v1915_v21, %v434_v32  ;;  %v1942_v36 = vmul.f32 %v1921_v24, %v402_v31  ;;  %v1945_v37 = vmul.f32 %v1926_v25, %v434_v32 }
  0xca   : > { %v1947_v38 = vpop.permute.xlu0 %365  ;;  %v1950_v39 = vmul.f32 %v1934_v30, %v402_v31  ;;  %v1959_v47 = vsel %vm409_vm0, %v419_v28, %v421_v29 }
  0xcb   : > { %v423_v40 = vrot.slane %v1947_v38, 1  ;;  %v378_v41 = vpop.permute.xlu1 %377  ;;  %v476_v52 = vadd.f32 %v468_v35, %v447_v34  ;;  %v505_v53 = vrot.slane %v1942_v36, 1  ;;  %v557_v54 = vrot.slane %v1945_v37, 1 }
  0xcc   : > { %v403_v44 = vsel %vm400_vm1, %v341_v10, %v378_v41  ;;  %v435_v45 = vsel %vm400_vm1, %v378_v41, %v416_v33  ;;  %v610_v56 = vrot.slane %v1950_v39, 2 }
  0xcd   : > { %v448_v48 = vmul.f32 %v1910_v20, %v403_v44  ;;  %v469_v49 = vmul.f32 %v1915_v21, %v435_v45  ;;  %v490_v50 = vmul.f32 %v1921_v24, %v403_v44  ;;  %v542_v51 = vmul.f32 %v1926_v25, %v435_v45 }
  0xce   : > { %v594_v55 = vmul.f32 %v1934_v30, %v403_v44  ;;  %v424_v61 = vsel %vm409_vm0, %v421_v29, %v423_v40 }
  0xcf   : > { %v507_v57 = vrot.slane %v490_v50, 1  ;;  %v559_v58 = vrot.slane %v542_v51, 1  ;;  %v382_v59 = vpop.permute.xlu1 %381  ;;  %v370_v60 = vpop.permute.xlu0 %369  ;;  %v477_v2 = vadd.f32 %v469_v49, %v448_v48 }
  0xd0   : > { %v612_v62 = vrot.slane %v594_v55, 2  ;;  %v404_v63 = vsel %vm400_vm1, %v346_v12, %v382_v59  ;;  %v436_v0 = vsel %vm400_vm1, %v382_v59, %v418_v42  ;;  %v401_v1 = vsel %vm400_vm1, %v331_v11, %v370_v60 }
  0xd1   : > { %v508_v3 = vsel %vm409_vm0, %v505_v53, %v507_v57  ;;  %v449_v4 = vmul.f32 %v1910_v20, %v404_v63  ;;  %v470_v5 = vmul.f32 %v1915_v21, %v436_v0  ;;  %v560_v7 = vsel %vm409_vm0, %v557_v54, %v559_v58 }
  0xd2   : > { %v528_v6 = vadd.f32 %v508_v3, %v476_v52  ;;  %v491_v8 = vmul.f32 %v1921_v24, %v404_v63  ;;  %v543_v9 = vmul.f32 %v1926_v25, %v436_v0  ;;  %v1982_v10 = vsel %vm608_vm2, %v610_v56, %v612_v62 }
  0xd3   : > { %v595_v12 = vmul.f32 %v1934_v30, %v404_v63  ;;  %v433_v11 = vsel %vm400_vm1, %v370_v60, %v412_v43  ;;  %v446_v13 = vmul.f32 %v1910_v20, %v401_v1  ;;  %v386_v16 = vpop.permute.xlu1 %385  ;;  %v478_v17 = vadd.f32 %v470_v5, %v449_v4  ;;  %v394_v45 = vpop.permute.xlu0 %393 }
  0xd4   : > { %v509_v18 = vrot.slane %v491_v8, 1  ;;  %v561_v22 = vrot.slane %v543_v9, 1  ;;  %v467_v23 = vmul.f32 %v1915_v21, %v433_v11  ;;  %v488_v27 = vmul.f32 %v1921_v24, %v401_v1 }
  0xd5   : > { %v614_v26 = vrot.slane %v595_v12, 2  ;;  %v540_v28 = vmul.f32 %v1926_v25, %v433_v11  ;;  %v592_v29 = vmul.f32 %v1934_v30, %v401_v1  ;;  %v580_v31 = vadd.f32 %v560_v7, %v528_v6 }
  0xd6   : > { %v510_v32 = vsel %vm409_vm0, %v507_v57, %v509_v18  ;;  %v475_v33 = vadd.f32 %v467_v23, %v446_v13  ;;  %v405_v34 = vsel %vm400_vm1, %v1903_v15, %v386_v16  ;;  %v562_v36 = vsel %vm409_vm0, %v559_v58, %v561_v22 }
  0xd7   : > { %v529_v35 = vadd.f32 %v510_v32, %v477_v2  ;;  %v504_v37 = vrot.slane %v488_v27, 1  ;;  %v556_v39 = vrot.slane %v540_v28, 1  ;;  %v609_v41 = vrot.slane %v592_v29, 2  ;;  %v390_v51 = vpop.permute.xlu1 %389 }
  0xd8   : > { %v437_v42 = vsel %vm400_vm1, %v386_v16, %v420_v46  ;;  %v450_v43 = vmul.f32 %v1910_v20, %v405_v34  ;;  %v492_v44 = vmul.f32 %v1921_v24, %v405_v34  ;;  %v2001_v49 = vsel %vm608_vm2, %v612_v62, %v614_v26 }
  0xd9   : > { %v1998_v48 = vadd.f32 %v562_v36, %v529_v35  ;;  %v506_v15 = vsel %vm409_vm0, %v504_v37, %v505_v53  ;;  %v471_v50 = vmul.f32 %v1915_v21, %v437_v42  ;;  %v558_v55 = vsel %vm409_vm0, %v556_v39, %v557_v54 }
  0xda   : > { %v527_v52 = vadd.f32 %v506_v15, %v475_v33  ;;  %v511_v57 = vrot.slane %v492_v44, 1  ;;  %v544_v46 = vmul.f32 %v1926_v25, %v437_v42  ;;  %v611_v58 = vsel %vm608_vm2, %v609_v41, %v610_v56 }
  0xdb   : > { %v596_v59 = vmul.f32 %v1934_v30, %v405_v34  ;;  %v407_v60 = vsel %vm400_vm1, %v1905_v19, %v394_v45  ;;  %v439_v62 = vsel %vm400_vm1, %v394_v45, %v424_v61  ;;  %v479_v63 = vadd.f32 %v471_v50, %v450_v43  ;;  %v398_v12 = vpop.permute.xlu1 %397 }
  0xdc   : > { %v512_v53 = vsel %vm409_vm0, %v509_v18, %v511_v57  ;;  %v563_v0 = vrot.slane %v544_v46, 1  ;;  %v452_v1 = vmul.f32 %v1910_v20, %v407_v60  ;;  %v473_v3 = vmul.f32 %v1915_v21, %v439_v62 }
  0xdd   : > { %v530_v2 = vadd.f32 %v512_v53, %v478_v17  ;;  %v616_v54 = vrot.slane %v596_v59, 2  ;;  %v494_v4 = vmul.f32 %v1921_v24, %v407_v60  ;;  %v579_v56 = vadd.f32 %v558_v55, %v527_v52 }
  0xde   : > { %v564_v5 = vsel %vm409_vm0, %v561_v22, %v563_v0  ;;  %v546_v6 = vmul.f32 %v1926_v25, %v439_v62  ;;  %v406_v19 = vsel %vm400_vm1, %v1901_v14, %v390_v51  ;;  %v481_v8 = vadd.f32 %v473_v3, %v452_v1 }
  0xdf   : > { %v582_v61 = vadd.f32 %v564_v5, %v530_v2  ;;  %v617_v7 = vsel %vm608_vm2, %v614_v26, %v616_v54  ;;  %v598_v9 = vmul.f32 %v1934_v30, %v407_v60  ;;  %v515_v11 = vrot.slane %v494_v4, 1 }
  0xe0   : > { %v567_v13 = vrot.slane %v546_v6, 1  ;;  %v438_v16 = vsel %vm400_vm1, %v390_v51, %v1959_v47  ;;  %v451_v17 = vmul.f32 %v1910_v20, %v406_v19  ;;  %v493_v22 = vmul.f32 %v1921_v24, %v406_v19 }
  0xe1   : > { %v472_v18 = vmul.f32 %v1915_v21, %v438_v16  ;;  %v545_v14 = vmul.f32 %v1926_v25, %v438_v16  ;;  %v597_v23 = vmul.f32 %v1934_v30, %v406_v19  ;;  %v408_v26 = vsel %vm400_vm1, %v1947_v38, %v398_v12 }
  0xe2   : > { %v440_v27 = vsel %vm400_vm1, %v398_v12, %v423_v40  ;;  %v632_v28 = vadd.f32 %v611_v58, %v579_v56  ;;  %v633_v47 = vadd.f32 %v1982_v10, %v580_v31  ;;  %v513_v32 = vrot.slane %v493_v22, 1  ;;  %v1371_v10 = vld [vmem:[%s2195_s2] ss:$0 sm:$0xff] }
  0xe3   : > { %v480_v29 = vadd.f32 %v472_v18, %v451_v17  ;;  %v565_v33 = vrot.slane %v545_v14, 1  ;;  %v618_v34 = vrot.slane %v597_v23, 2  ;;  %v453_v35 = vmul.f32 %v1910_v20, %v408_v26  ;;  %v1643_v20 = vld [vmem:[%s2196_s3 + $0x20] sm:$0xff]  }
  0xe4   : > { %v474_v36 = vmul.f32 %v1915_v21, %v440_v27  ;;  %v495_v37 = vmul.f32 %v1921_v24, %v408_v26  ;;  %v547_v39 = vmul.f32 %v1926_v25, %v440_v27  ;;  %v620_v41 = vrot.slane %v598_v9, 2  ;;  %1466 = vmatprep.subr.bf16.mxu0 %v1643_v20  ;;  %v1647_v27 = vld [vmem:[%s2196_s3] sm:$0xff]  }
  0xe5   : > { %v514_v38 = vsel %vm409_vm0, %v511_v57, %v513_v32  ;;  %v516_v40 = vsel %vm409_vm0, %v513_v32, %v515_v11  ;;  %v566_v42 = vsel %vm409_vm0, %v563_v0, %v565_v33  ;;  %v568_v24 = vsel %vm409_vm0, %v565_v33, %v567_v13  ;;  %1467 = vmatpush3.bf16.msra.mxu0 %v1643_v20 }
  0xe6   : > { %v531_v21 = vadd.f32 %v514_v38, %v479_v63  ;;  %v532_v31 = vadd.f32 %v516_v40, %v480_v29  ;;  %v619_v25 = vsel %vm608_vm2, %v616_v54, %v618_v34  ;;  %v482_v43 = vadd.f32 %v474_v36, %v453_v35 }
  0xe7   : > { %v517_v44 = vrot.slane %v495_v37, 1  ;;  %v569_v45 = vrot.slane %v547_v39, 1  ;;  %v599_v15 = vmul.f32 %v1934_v30, %v408_v26  ;;  %v647_v52 = vadd.f32 %v1371_v10, %v632_v28  ;;  %v1644_v30 = vld [vmem:[%s2196_s3 + $0x28] sm:$0xff]  }
  0xe8   : > { %v583_v50 = vadd.f32 %v566_v42, %v531_v21  ;;  %v584_v51 = vadd.f32 %v568_v24, %v532_v31  ;;  %v648_v55 = vadd.f32 %v1371_v10, %v633_v47  ;;  %v621_v57 = vsel %vm608_vm2, %v618_v34, %v620_v41  ;;  %1468 = vmatprep.subr.bf16.mxu0 %v1644_v30 }
  0xe9   : > { %v518_v46 = vsel %vm409_vm0, %v515_v11, %v517_v44  ;;  %v534_v58 = vadd.f32 %v517_v44, %v482_v43  ;;  %v622_v59 = vrot.slane %v599_v15, 2  ;;  %v655_v62 = vmax.f32 %v647_v52, 0.0  ;;  %1469 = vmatpush3.bf16.msra.mxu0 %v1644_v30 }
  0xea   : > { %v533_v60 = vadd.f32 %v518_v46, %v481_v8  ;;  %v656_v63 = vmax.f32 %v648_v55, 0.0  ;;  %v634_v53 = vadd.f32 %v2001_v49, %v1998_v48  ;;  %v570_v0 = vsel %vm409_vm0, %v567_v13, %v569_v45  ;;  %v1645_v48 = vld [vmem:[%s2196_s3 + $0x30] sm:$0xff]  }
  0xeb   : > { %v586_v1 = vadd.f32 %v569_v45, %v534_v58  ;;  %v635_v2 = vadd.f32 %v617_v7, %v582_v61  ;;  %v636_v54 = vadd.f32 %v619_v25, %v583_v50  ;;  %v637_v5 = vadd.f32 %v621_v57, %v584_v51  ;;  %v1646_v7 = vld [vmem:[%s2196_s3 + $0x38] sm:$0xff]   ;;  %1470 = vmatprep.subr.bf16.mxu0 %v1645_v48 }
  0xec   : > { %v585_v3 = vadd.f32 %v570_v0, %v533_v60  ;;  %v1623_v4 = vpack.i.bf16 %v656_v63, %v655_v62  ;;  %v649_v56 = vadd.f32 %v1371_v10, %v634_v53  ;;  %v623_v6 = vsel %vm608_vm2, %v620_v41, %v622_v59 }
  0xed   : > { %v639_v19 = vadd.f32 %v622_v59, %v586_v1  ;;  %v650_v8 = vadd.f32 %v1371_v10, %v635_v2  ;;  %v651_v9 = vadd.f32 %v1371_v10, %v636_v54  ;;  %v652_v49 = vadd.f32 %v1371_v10, %v637_v5  ;;  %1471 = vmatpush3.bf16.msra.mxu0 %v1645_v48  ;;  %v1648_v1 = vld [vmem:[%s2196_s3 + $0x8] sm:$0xff]   ;;  %v1653_v48 = vld [vmem:[%s2196_s3 + $0x50] sm:$0xff]  }
  0xee   : > { %1624 = vrot.lane.b32.xlu1 %v1623_v4, %s1764_s18  ;;  %v638_v61 = vadd.f32 %v623_v6, %v585_v3  ;;  %v657_v12 = vmax.f32 %v649_v56, 0.0  ;;  %1472 = vmatprep.subr.bf16.mxu0 %v1646_v7  ;;  %v1649_v56 = vld [vmem:[%s2196_s3 + $0x10] sm:$0xff]  }
  0xef   : > { %v658_v11 = vmax.f32 %v650_v8, 0.0  ;;  %v659_v13 = vmax.f32 %v651_v9, 0.0  ;;  %v654_v16 = vadd.f32 %v1371_v10, %v639_v19  ;;  %v660_v17 = vmax.f32 %v652_v49, 0.0  ;;  %v1650_v19 = vld [vmem:[%s2196_s3 + $0x18] sm:$0xff]   ;;  %v1651_v8 = vld [vmem:[%s2196_s3 + $0x40] sm:$0xff]   ;;  %v1652_v9 = vld [vmem:[%s2196_s3 + $0x48] sm:$0xff]  }
  0xf0   : > { %v653_v18 = vadd.f32 %v1371_v10, %v638_v61 }
  0xf1   : > { %v1628_v22 = vpack.i.bf16 %v658_v11, %v657_v12  ;;  %v662_v14 = vmax.f32 %v654_v16, 0.0  ;;  %v1633_v23 = vpack.i.bf16 %v660_v17, %v659_v13  ;;  %1473 = vmatpush3.bf16.msra.mxu0 %v1646_v7  ;;  %v1654_v7 = vld [vmem:[%s2196_s3 + $0x58] sm:$0xff]  }
  0xf2   : > { %v661_v26 = vmax.f32 %v653_v18, 0.0  ;;  %1482 = vmatprep.subr.bf16.mxu0 %v1647_v27  ;;  %v1765_v18 = vmov 0.0  }
  0xf3   : > { %1629 = vrot.lane.b32.xlu0 %v1628_v22, %s1764_s18  ;;  %1634 = vrot.lane.b32.xlu1 %v1633_v23, %s1764_s18  ;;  %v1412_v22 = vld [vmem:[%s2197_s4] ss:$0 sm:$0xff] }
  0xf4   : > { %v1638_v28 = vpack.i.bf16 %v662_v14, %v661_v26  ;;  %1514 = vmatprep.subr.bf16.mxu1 %v1765_v18  ;;  %1522 = vmatprep.mubr.msk.bf16.mxu1 %vm1766_vm4, %v1765_v18 }
  0xf7   : > { %1639 = vrot.lane.b32.xlu0 %v1638_v28, %s1764_s18 }
 0x160   : > { %v1625_v47 = vpop.permute.xlu1 %1624 }
 0x161   : > { %v1627_v29 = vunpack.i.h.bf16 %v1625_v47  ;;  %v1626_v32 = vunpack.i.l.bf16 %v1625_v47 }
 0x163   : > { %v696_v33 = vmax.f32 %v656_v63, %v1627_v29  ;;  %v695_v34 = vmax.f32 %v655_v62, %v1626_v32 }
 0x165   : > { %v2069_v35 = vpack.c.bf16 %v696_v33, %v695_v34  ;;  %v1630_v36 = vpop.permute.xlu0 %1629  ;;  %v1635_v41 = vpop.permute.xlu1 %1634 }
 0x166   : > { %v1632_v37 = vunpack.i.h.bf16 %v1630_v36  ;;  %v1631_v39 = vunpack.i.l.bf16 %v1630_v36  ;;  %v1637_v38 = vunpack.i.h.bf16 %v1635_v41  ;;  %v1636_v40 = vunpack.i.l.bf16 %v1635_v41 }
 0x167   : > { %v728_v42 = vshll.u32 %v2069_v35, 16  ;;  %v726_v52 = vshrl.u32 %v2069_v35, 16  ;;  %v968_v61 = vrot.slane %v2069_v35, 1 }
 0x168   : > { %v698_v10 = vmax.f32 %v658_v11, %v1632_v37  ;;  %v697_v20 = vmax.f32 %v657_v12, %v1631_v39  ;;  %v700_v21 = vmax.f32 %v660_v17, %v1637_v38  ;;  %v699_v31 = vmax.f32 %v659_v13, %v1636_v40 }
 0x169   : > { %v1640_v24 = vpop.permute.xlu0 %1639  ;;  %v730_v45 = vrot.slane %v728_v42, 1 }
 0x16a   : > { %v2072_v25 = vpack.c.bf16 %v698_v10, %v697_v20  ;;  %v1642_v43 = vunpack.i.h.bf16 %v1640_v24  ;;  %v1641_v44 = vunpack.i.l.bf16 %v1640_v24  ;;  %v705_v15 = vpack.c.bf16 %v700_v21, %v699_v31 }
 0x16b   : > { %v731_v58 = vor.u32 %v730_v45, %v726_v52  ;;  %v1655_v52 = vld [vmem:[#allocation2] sm:$0xff]  }
 0x16c   : > { %v702_v50 = vmax.f32 %v662_v14, %v1642_v43  ;;  %v701_v51 = vmax.f32 %v661_v26, %v1641_v44  ;;  %v733_v55 = vshll.u32 %v2072_v25, 16  ;;  %v741_v57 = vshll.u32 %v705_v15, 16 }
 0x16d   : > { %v737_v60 = vshrl.u32 %v2072_v25, 16  ;;  %v745_v30 = vshrl.u32 %v705_v15, 16  ;;  %v969_v49 = vrot.slane %v2072_v25, 1  ;;  %v971_v11 = vrot.slane %v705_v15, 1 }
 0x16e   : > { %v706_v46 = vpack.c.bf16 %v702_v50, %v701_v51  ;;  %v735_v59 = vrot.slane %v733_v55, 1  ;;  %v743_v62 = vrot.slane %v741_v57, 1  ;;  %v1107_v51 = vld [vmem:[%s2198_s5] sm:$0x3]  ;;  %v1656_v55 = vld [vmem:[#allocation2 + $0x8] sm:$0xff]   ;;  %v1657_v57 = vld [vmem:[#allocation2 + $0x10] sm:$0xff]  }
 0x16f   : > { %v970_v12 = vsel %vm409_vm0, %v968_v61, %v969_v49  ;;  %v972_v16 = vsel %vm409_vm0, %v969_v49, %v971_v11 }
 0x170   : > { %v736_v63 = vsel %vm724_vm3, %v731_v58, %v735_v59  ;;  %v739_v53 = vor.u32 %v737_v60, %v735_v59  ;;  %v749_v0 = vshll.u32 %v706_v46, 16  ;;  %v747_v54 = vor.u32 %v745_v30, %v743_v62  ;;  %v1659_v58 = vld [vmem:[#allocation2 + $0x20] sm:$0xff]   ;;  %v1660_v59 = vld [vmem:[#allocation2 + $0x28] sm:$0xff]   ;;  %v1661_v60 = vld [vmem:[#allocation2 + $0x30] sm:$0xff]  }
 0x171   : > { %1474 = vmatprep.mubr.msk.bf16.mxu0 %vm400_vm1, %v736_v63  ;;  %v753_v5 = vshrl.u32 %v706_v46, 16  ;;  %v973_v13 = vrot.slane %v706_v46, 1 }
 0x172   : > { %v744_v2 = vsel %vm724_vm3, %v739_v53, %v743_v62  ;;  %v751_v3 = vrot.slane %v749_v0, 1  ;;  %v1662_v62 = vld [vmem:[#allocation2 + $0x38] sm:$0xff]  }
 0x173   : > { %1475 = vmatmul.mubr.msk.bf16.vlgmr.msra.gmra.mrb[0].mxu0 %vm400_vm1, %v744_v2  ;;  %v974_v17 = vsel %vm409_vm0, %v971_v11, %v973_v13  ;;  %v1414_v2 = vld [vmem:[%s2200_s7] ss:$0 sm:$0xff] }
 0x174   : > { %1483 = vmatpush3.bf16.msra.mxu0 %v1647_v27  ;;  %v752_v4 = vsel %vm724_vm3, %v747_v54, %v751_v3  ;;  %v755_v6 = vor.u32 %v753_v5, %v751_v3 }
 0x175   : > { %1484 = vmatprep.subr.bf16.mxu0 %v1648_v1  ;;  %1478 = vmatprep.mubr.msk.bf16.mxu0 %vm400_vm1, %v752_v4 }
 0x178   : > { %1485 = vmatpush3.bf16.msra.mxu0 %v1648_v1 }
 0x179   : > { %1486 = vmatprep.subr.bf16.mxu0 %v1649_v56 }
 0x17b   : > { %1479 = vmatmul.mubr.msk.bf16.gmra.mrb[4].mxu0 %vm400_vm1, %v755_v6 }
 0x17c   : > { %1487 = vmatpush3.bf16.msra.mxu0 %v1649_v56  ;;  %1490 = vmatprep.mubr.msk.bf16.mxu0 %vm400_vm1, %v2069_v35 }
 0x17d   : > { %1488 = vmatprep.subr.bf16.mxu0 %v1650_v19 }
 0x180   : > { %1489 = vmatpush3.bf16.msra.mxu0 %v1650_v19 }
 0x181   : > { %1498 = vmatprep.subr.bf16.mxu0 %v1651_v8 }
 0x183   : > { %1491 = vmatmul.mubr.msk.bf16.vlgmr.msra.gmra.mrb[0].mxu0 %vm400_vm1, %v2072_v25 }
 0x184   : > { %1499 = vmatpush3.bf16.msra.mxu0 %v1651_v8  ;;  %1494 = vmatprep.mubr.msk.bf16.mxu0 %vm400_vm1, %v705_v15 }
 0x185   : > { %1500 = vmatprep.subr.bf16.mxu0 %v1652_v9 }
 0x188   : > { %1501 = vmatpush3.bf16.msra.mxu0 %v1652_v9 }
 0x189   : > { %1502 = vmatprep.subr.bf16.mxu0 %v1653_v48 }
 0x18b   : > { %1495 = vmatmul.mubr.msk.bf16.gmra.mrb[4].mxu0 %vm400_vm1, %v706_v46  ;;  %v1658_v46 = vld [vmem:[#allocation2 + $0x18] sm:$0xff]  }
 0x18c   : > { %1503 = vmatpush3.bf16.msra.mxu0 %v1653_v48  ;;  %1506 = vmatprep.mubr.msk.bf16.mxu0 %vm400_vm1, %v970_v12 }
 0x18d   : > { %1504 = vmatprep.subr.bf16.mxu0 %v1654_v7 }
 0x190   : > { %1505 = vmatpush3.bf16.msra.mxu0 %v1654_v7 }
 0x193   : > { %1507 = vmatmul.mubr.msk.bf16.vlgmr.msra.gmra.mrb[0].mxu0 %vm400_vm1, %v972_v16 }
 0x194   : > { %1510 = vmatprep.mubr.msk.bf16.mxu0 %vm400_vm1, %v974_v17 }
 0x19b   : > { %1511 = vmatmul.mubr.msk.bf16.gmra.mrb[4].mxu0 %vm400_vm1, %v973_v13 }
 0x266   : > { %v1508_v14 = vpop.f32.mrb[0].mxu0 }
 0x267   : > { %v1093_v23 = vadd.f32 %v1508_v14, %v1412_v22  ;;  %v1045_v26 = vpop.f32.mrb[1].mxu0 }
 0x268   : > { %v1091_v27 = vadd.f32 %v1412_v22, %v1045_v26  ;;  %v1509_v28 = vpop.f32.mrb[2].mxu0 }
 0x269   : > { %v1094_v47 = vadd.f32 %v1509_v28, %v1412_v22  ;;  %v1048_v29 = vpop.f32.mrb[3].mxu0  ;;  %v1101_v33 = vmax.f32 %v1093_v23, 0.0 }
 0x26a   : > { %v1092_v32 = vadd.f32 %v1412_v22, %v1048_v29  ;;  %v1099_v35 = vmax.f32 %v1091_v27, 0.0 }
 0x26b   : > { %v1102_v34 = vmax.f32 %v1094_v47, 0.0 }
 0x26c   : > { %v1100_v36 = vmax.f32 %v1092_v32, 0.0 }
 0x26d   : > { %v1109_v37 = vpack.c.bf16 %v1102_v34, %v1101_v33 }
 0x26e   : > { %v1512_v39 = vpop.f32.mrb[4].mxu0  ;;  %v1108_v41 = vpack.c.bf16 %v1100_v36, %v1099_v35 }
 0x26f   : > { %v1097_v38 = vadd.f32 %v1512_v39, %v1412_v22  ;;  %v1061_v40 = vpop.f32.mrb[5].mxu0 }
 0x270   : > { %v1095_v42 = vadd.f32 %v1412_v22, %v1061_v40  ;;  %v1513_v10 = vpop.f32.mrb[6].mxu0  ;;  %1515 = vmatpush3.bf16.msra.mxu1 %v1108_v41 }
 0x271   : > { %v1098_v20 = vadd.f32 %v1513_v10, %v1412_v22  ;;  %v1064_v21 = vpop.f32.mrb[7].mxu0  ;;  %1516 = vmatprep.subr.bf16.mxu1 %v1765_v18  ;;  %v1105_v24 = vmax.f32 %v1097_v38, 0.0 }
 0x272   : > { %v1096_v31 = vadd.f32 %v1412_v22, %v1064_v21  ;;  %v1103_v43 = vmax.f32 %v1095_v42, 0.0 }
 0x273   : > { %v1106_v25 = vmax.f32 %v1098_v20, 0.0 }
 0x274   : > { %v1104_v44 = vmax.f32 %v1096_v31, 0.0  ;;  %1517 = vmatpush3.bf16.msra.mxu1 %v1109_v37 }
 0x275   : > { %v1111_v45 = vpack.c.bf16 %v1106_v25, %v1105_v24  ;;  %1518 = vmatprep.subr.bf16.mxu1 %v1765_v18 }
 0x276   : > { %v1110_v15 = vpack.c.bf16 %v1104_v44, %v1103_v43 }
 0x277   : > { %v1117_v50 = vsel %vm608_vm2, %v1111_v45, 0 }
 0x278   : > { %1519 = vmatpush3.bf16.msra.mxu1 %v1110_v15 }
 0x279   : > { %1520 = vmatprep.subr.bf16.mxu1 %v1765_v18 }
 0x27c   : > { %1521 = vmatpush3.bf16.msra.mxu1 %v1117_v50 }
 0x27d   : > { %1526 = vmatprep.subr.bf16.mxu1 %v1765_v18 }
 0x27f   : > { %1523 = vmatmul.mubr.msk.bf16.vlgmr.msra.gmra.mrb[0].mxu1 %vm1112_vm5, %v1107_v51 }
 0x280   : > { %1527 = vmatpush3.bf16.msra.mxu1 %v1655_v52  ;;  %1542 = vmatprep.mubr.msk.bf16.mxu1 %vm1766_vm4, %v1765_v18 }
 0x281   : > { %1528 = vmatprep.subr.bf16.mxu1 %v1765_v18 }
 0x284   : > { %1529 = vmatpush3.bf16.msra.mxu1 %v1656_v55 }
 0x285   : > { %1530 = vmatprep.subr.bf16.mxu1 %v1765_v18 }
 0x288   : > { %1531 = vmatpush3.bf16.msra.mxu1 %v1657_v57 }
 0x289   : > { %1532 = vmatprep.subr.bf16.mxu1 %v1765_v18 }
 0x28c   : > { %1533 = vmatpush3.bf16.msra.mxu1 %v1658_v46 }
 0x28d   : > { %1534 = vmatprep.subr.bf16.mxu1 %v1765_v18 }
 0x290   : > { %1535 = vmatpush3.bf16.msra.mxu1 %v1659_v58 }
 0x291   : > { %1536 = vmatprep.subr.bf16.mxu1 %v1765_v18 }
 0x294   : > { %1537 = vmatpush3.bf16.msra.mxu1 %v1660_v59 }
 0x295   : > { %1538 = vmatprep.subr.bf16.mxu1 %v1765_v18 }
 0x298   : > { %1539 = vmatpush3.bf16.msra.mxu1 %v1661_v60 }
 0x299   : > { %1540 = vmatprep.subr.bf16.mxu1 %v1765_v18 }
 0x29c   : > { %1541 = vmatpush3.bf16.msra.mxu1 %v1662_v62 }
 0x352   : > { %v1153_v63 = vpop.f32.mrb[0].mxu1 }
 0x353   : > { %v1159_v53 = vpack.c.bf16 %v1153_v63, %v1153_v63  ;;  %v1524_v30 = vpop.f32.mrb[1].mxu1 }
 0x354   : > { %v1156_v0 = vpop.f32.mrb[2].mxu1 }
 0x355   : > { %v1525_v1 = vpop.f32.mrb[3].mxu1  ;;  %1543 = vmatmul.mubr.bf16.vlgmr.msra.gmra.mrb[4].mxu1 %v1159_v53 }
 0x428   : > { %v1265_v54 = vpop.f32.mrb[4].mxu1 }
 0x429   : > { %v1266_v3 = vadd.f32 %v1414_v2, %v1265_v54  ;;  %v1544_v4 = vpop.f32.mrb[5].mxu1 }
 0x42a   : > { %v1268_v56 = vpop.f32.mrb[6].mxu1 }
 0x42b   : > { %1271 = vst [vmem:[%s313_s22] sm:$0xf] %v1266_v3  ;;  %v1545_v5 = vpop.f32.mrb[7].mxu1 }
 0x42c   : > { %1704 = shalt.err (!%p1701_p7)
}
 0x42d   : > { %s1705_s10 = scalar_lea.hbm %s2151_s25, 64  ;;  %s1709_s21 = scalar_lea.hbm %s2201_s8, 128 }
 0x42e   : > { %p1706_p8 = scmp.ne.s32.totalorder %s2151_s25, %s1705_s10  ;;  %p1710_p1 = scmp.lt.u32.totalorder %s2151_s25, %s2201_s8 }
 0x42f   : > { %p1711_p0 = scmp.lt.u32.totalorder %s1709_s21, %s1705_s10  ;;  %p1713_p6 = scmp.lt.u32.totalorder %s1705_s10, %s2151_s25 }
 0x430   : > { %p1707_p11 = pnand %p1706_p8, %p2212_p9 }
 0x431   : > { %p1712_p5 = por %p1711_p0, %p1710_p1 }
 0x432   : > { %p1708_p13 = pneg %p1707_p11 }
 0x433   : > { %p1714_p10 = por %p1713_p6, %p1712_p5 }
 0x435   : > { %p1715_p12 = pnand %p1714_p10, %p1708_p13 }
 0x437   : > { %1718 = shalt.err (!%p1715_p12)
}
 0x438   : > { %1566 = dma.vmem_to_hbm [thread:$0]  (%p2212_p9), %s2153_s20, 64, %s2151_s25, %s1273_s19  }
 0x439 PF: > { %p1578_p2 = scmp.ge.s32.totalorder %s1757_s30, 2  ;;  %s1298_s24 = sand.u32 1, %s1745_s27  }
 0x43a   : > { %p2213_p3 = scmp.ne.s32.totalorder %s2206_s16, 0  ;;  %s1299_s9 = scalar_lea.sflag [#allocation4], %s1298_s24 }
 0x43c   : > { %p1573_p4 = pnand %p1578_p2, %p2213_p3 }
 0x43e   : > { %1740 = dma.done.wait (!%p1573_p4), %s1299_s9, 64  }
 0x43f   : > { %1742 = vsyncadd (!%p1573_p4), %s1299_s9, 4294967232  ;;  %p19_p7 = scmp.ge.s32.totalorder %s1838_s11, 4   ;;  %s2214_s27 = smov %s1749_s28 }
 0x440   : > { %s2215_s28 = smov %s1753_s29  ;;  %s2216_s29 = smov %s1849_s14 }
 0x441   : > { %s2217_s30 = smov %s1838_s11  ;;  %21 = sbr.rel (!%p19_p7) target bundleno = 4 (0x4), region = 94 }
 0x448   :  { %1304 = vsyncpa [#allocation3], 1 }
 0x449   :  { %1306 = vsyncpa [#allocation3 + $0x1], 1 }
 0x44a   :  { %1307 = vsyncpa [#allocation4], 1 }
 0x44b   :  { %1309 = vsyncpa [#allocation4 + $0x1], 1 }

</bundles_post_ra>
